<compile_context>
chip_gen: v5e
topology: v5e:2x2
jax: 0.10.0
libtpu: 0.0.40
codegen_flags: <defaults>
</compile_context>

<pallas_src>
import jax
import jax.numpy as jnp
from jax.experimental import pallas as pl
from jax.experimental.pallas import tpu as pltpu

_BATCH_TILE_MAX = 4096     # cap on the batch tile for the tiled path
_TILED_BATCH_MIN = 1024    # below this, use the gridless whole-in-VMEM path


def _round_up(x, m):
    return ((x + m - 1) // m) * m


def _linear_kernel(x_ref, w_ref, b_ref, o_ref):
    # x_ref: (TB, D_in)   w_ref: (D_in, D_out)   b_ref: (1, D_out)
    # o_ref: (TB, D_out)  -- all float32, D_out is the real head_emb_dim.
    acc = jnp.dot(x_ref[...], w_ref[...],
                  preferred_element_type=jnp.float32,
                  precision=jax.lax.Precision.HIGHEST)
    o_ref[...] = acc + b_ref[...]          # f32 in, f32 out: no cast needed


def prepare_params(weight, bias):
    """One-time parameter prep (do at init, NOT per forward call):
    transpose to (D_in, D_out). No lane padding -- the kernel emits a compact
    (B, head_emb_dim) output, so padded lanes would only add HBM traffic."""
    w_t = jnp.asarray(weight).T                      # (D_in, D_out)
    b2 = jnp.asarray(bias).reshape(1, -1)            # (1, D_out)
    return w_t, b2


def head_measure_encoder(head_anthro, w_t, b2):
    """Forward pass. head_anthro: (B, D_in) f32; w_t/b2 from prepare_params."""
    B, d_in = head_anthro.shape
    d_out = w_t.shape[1]
    assert w_t.shape[0] == d_in and b2.shape == (1, d_out)

    if B >= _TILED_BATCH_MIN:
        # Large batch: tile B on a 'parallel' grid axis.  Pick the largest
        # tile <= _BATCH_TILE_MAX that still keeps >= 4 grid steps (v7x has
        # 2 TensorCores; >= 2 steps per core keeps DMA pipelined w/ compute).
        tb = min(_BATCH_TILE_MAX, _round_up(pl.cdiv(B, 4), 8))
        tb = max(tb, 8)
        grid = pl.cdiv(B, tb)          # ragged final block is masked by Pallas
        out = pl.pallas_call(
            _linear_kernel,
            out_shape=jax.ShapeDtypeStruct((B, d_out), head_anthro.dtype),
            grid=(grid,),
            in_specs=[
                pl.BlockSpec((tb, d_in), lambda i: (i, 0)),
                pl.BlockSpec((d_in, d_out), lambda i: (0, 0)),
                pl.BlockSpec((1, d_out), lambda i: (0, 0)),
            ],
            out_specs=pl.BlockSpec((tb, d_out), lambda i: (i, 0)),
            compiler_params=pltpu.CompilerParams(
                dimension_semantics=("parallel",)),
        )(head_anthro, w_t, b2)
    else:
        # Small batch: no grid, no pipeline machinery; whole operands in VMEM.
        # (In production, prefer letting XLA fuse this tiny Linear instead.)
        out = pl.pallas_call(
            _linear_kernel,
            out_shape=jax.ShapeDtypeStruct((B, d_out), head_anthro.dtype),
            in_specs=[
                pl.BlockSpec(memory_space=pltpu.MemorySpace.VMEM),
                pl.BlockSpec(memory_space=pltpu.MemorySpace.VMEM),
                pl.BlockSpec(memory_space=pltpu.MemorySpace.VMEM),
            ],
            out_specs=pl.BlockSpec(memory_space=pltpu.MemorySpace.VMEM),
        )(head_anthro, w_t, b2)

    return out


if __name__ == "__main__":
    # Small shapes consistent with the module: B=2, head_anthro_dim=16, head_emb_dim=32.
    B, head_anthro_dim, head_emb_dim = 2, 16, 32

    key = jax.random.PRNGKey(0)
    k_x, k_w, k_b = jax.random.split(key, 3)

    head_anthro = jax.random.normal(k_x, (B, head_anthro_dim), dtype=jnp.float32)

    # nn.Linear default init: U(-1/sqrt(fan_in), 1/sqrt(fan_in)).
    bound = 1.0 / (head_anthro_dim ** 0.5)
    weight = jax.random.uniform(k_w, (head_emb_dim, head_anthro_dim),
                                minval=-bound, maxval=bound, dtype=jnp.float32)
    bias = jax.random.uniform(k_b, (head_emb_dim,),
                              minval=-bound, maxval=bound, dtype=jnp.float32)

    # One-time parameter prep (transpose) outside the hot path.
    w_t, b2 = prepare_params(weight, bias)

    out = head_measure_encoder(head_anthro, w_t, b2)
    out = jax.block_until_ready(out)

    ref = head_anthro @ weight.T + bias
    assert out.shape == (B, head_emb_dim)
    assert jnp.allclose(out, ref, atol=1e-5, rtol=1e-5)

    # Also exercise the batch-tiled 'parallel' path, including a ragged
    # (non-divisible) final block, once.
    B_big = 1500
    x_big = jax.random.normal(jax.random.PRNGKey(1), (B_big, head_anthro_dim),
                              dtype=jnp.float32)
    out_big = jax.block_until_ready(head_measure_encoder(x_big, w_t, b2))
    ref_big = x_big @ weight.T + bias
    assert out_big.shape == (B_big, head_emb_dim)
    assert jnp.allclose(out_big, ref_big, atol=1e-4, rtol=1e-4)

    print("KERNEL_OK")
</pallas_src>

<mosaic_0001>
module attributes {stable_mosaic.version = 11 : i64} {
  func.func @_linear_kernel(%arg0: memref<2x16xf32, #tpu.memory_space<vmem>>, %arg1: memref<16x32xf32, #tpu.memory_space<vmem>>, %arg2: memref<1x32xf32, #tpu.memory_space<vmem>>, %arg3: memref<2x32xf32, #tpu.memory_space<vmem>>) attributes {dimension_semantics = [], scalar_prefetch = 0 : i64, scratch_operands = 0 : i64, tpu.core_type = #tpu.core_type<tc>} {
    %c0 = arith.constant 0 : index
    %c0_0 = arith.constant 0 : index
    %0 = vector.load %arg0[%c0, %c0_0] : memref<2x16xf32, #tpu.memory_space<vmem>>, vector<2x16xf32>
    %c0_1 = arith.constant 0 : index
    %c0_2 = arith.constant 0 : index
    %1 = vector.load %arg1[%c0_1, %c0_2] : memref<16x32xf32, #tpu.memory_space<vmem>>, vector<16x32xf32>
    %cst = arith.constant dense<0.000000e+00> : vector<2x32xf32>
    %2 = tpu.matmul %0, %1, %cst {dimension_numbers = #tpu.dot_dimension_numbers<[1], [0], [0], [1], [0, 0, 1, 1], [], []>, precision = #tpu.contract_precision<fp32>} : vector<2x16xf32>, vector<16x32xf32>, vector<2x32xf32> -> vector<2x32xf32>
    %c0_3 = arith.constant 0 : index
    %c0_4 = arith.constant 0 : index
    %3 = vector.load %arg2[%c0_3, %c0_4] : memref<1x32xf32, #tpu.memory_space<vmem>>, vector<1x32xf32>
    %4 = vector.broadcast %3 : vector<1x32xf32> to vector<2x32xf32>
    %5 = arith.addf %2, %4 : vector<2x32xf32>
    %c0_5 = arith.constant 0 : index
    %c0_6 = arith.constant 0 : index
    %6 = vector.load %arg3[%c0_5, %c0_6] : memref<2x32xf32, #tpu.memory_space<vmem>>, vector<2x32xf32>
    tpu.vector_store %arg3[%c0_5, %c0_6], %5 {strides = array<i32>} : memref<2x32xf32, #tpu.memory_space<vmem>>, vector<2x32xf32>,
    return
  }
}

</mosaic_0001>

<bundles_post_ra>
// kernel: tpu_custom_call.1
= control target key start
LH: loop header
LB: loop body
LE: loop exit
PB: predicated region body
PF: predicated region fallthrough
CT: control target
= control target key end

     0   :  { %8 = vsyncpa [#allocation3], 0  ;;  %s356_s0 = inlined_call_operand.hbm [shape: f32[2,16], index: 0, kind: input, shape index: {}]   ;;  %s357_s1 = inlined_call_operand.hbm [shape: f32[16,32], index: 1, kind: input, shape index: {}]   ;;  %s358_s2 = inlined_call_operand.vmem [shape: f32[1,32], index: 2, kind: input, shape index: {}]   ;;  %s359_s3 = inlined_call_operand.hbm [shape: f32[2,32], index: 3, kind: output, shape index: {}]  }
   0x1   :  { %9 = vsyncpa [#allocation6], 0 }
   0x2   :  { %10 = vsyncpa [#allocation4], 0  ;;  %s16_s14 = sshll.u32 %s356_s0, 4  ;;  %s319_s15 = smov [#allocation2]   ;;  %s17_s14 = int_to_ptr.hbm [resolvable:$true] %s16_s14 }
   0x3   :  { %s18_s16 = sshll.u32 %s319_s15, 4  ;;  %s26_s19 = sshll.u32 %s357_s1, 4  ;;  %s19_s16 = int_to_ptr.vmem [resolvable:$true] %s18_s16  ;;  %s27_s19 = int_to_ptr.hbm [resolvable:$true] %s26_s19 }
   0x4   :  { %21 = dma.hbm_to_vmem [thread:$0]  %s17_s14, 32, %s19_s16, [#allocation3]  }
   0x5   :  { %s320_s20 = smov [#allocation5]   ;;  %s321_s22 = smov 128  }
   0x6   :  { %s28_s21 = sshll.u32 %s320_s20, 4  ;;  %s322_s23 = smov 8   ;;  %s29_s21 = int_to_ptr.vmem [resolvable:$true] %s28_s21 }
   0x7   :  { %34 = dma.hbm_to_vmem [thread:$0]  %s27_s19, 256, %s29_s21, [#allocation6], %s321_s22, %s321_s22, %s322_s23  }
   0x8   :  { %313 = dma.done.wait [#allocation3], 32  }
   0x9   :  { %314 = vsyncadd [#allocation3], 4294967264 }
   0xa   :  { %315 = dma.done.wait [#allocation6], 256  }
   0xb   :  { %316 = vsyncadd [#allocation6], 4294967040  ;;  %vm52_vm0 = vcmask 130048   ;;  %v47_v0 = vld [vmem:[#allocation5 + $0x8] sm:$0xff]  ;;  %v46_v1 = vld [vmem:[#allocation5] sm:$0xff]  ;;  %s323_s24 = smov [#allocation7]  }
   0xc   :  { %v45_v2 = vld [vmem:[#allocation2] sm:$0x3]  ;;  %v70_v3 = vand.u32 4294901760, %v47_v0  ;;  %v72_v4 = vand.u32 4294901760, %v46_v1  ;;  %s222_s25 = sshll.u32 %s323_s24, 4  ;;  %s224_s28 = sshll.u32 %s359_s3, 4  ;;  %s223_s25 = int_to_ptr.vmem [resolvable:$true] %s222_s25  ;;  %s225_s28 = int_to_ptr.hbm [resolvable:$true] %s224_s28 }
   0xd   :  { %v54_v5 = vsel %vm52_vm0, %v45_v2, 0  ;;  %v240_v19 = vld [vmem:[%s358_s2] ss:$0 sm:$0xff]  ;;  %vm215_vm1 = vcmask 254976  }
   0xe   :  { %v74_v6 = vand.u32 4294901760, %v54_v5  ;;  %v98_v7 = vsub.f32 %v47_v0, %v70_v3  ;;  %71 = vmatpush.msra.mxu0 %v70_v3  ;;  %v104_v8 = vsub.f32 %v46_v1, %v72_v4  ;;  %155 = vmatpush.msra.mxu3 %v70_v3 }
  0x10   :  { %v75_v9 = vsub.f32 %v54_v5, %v74_v6  ;;  %130 = vmatpush.msra.mxu2 %v98_v7  ;;  %73 = vmatpush.msra.mxu0 %v72_v4  ;;  %v99_v10 = vand.u32 4294901760, %v98_v7  ;;  %v105_v11 = vand.u32 4294901760, %v104_v8 }
  0x11   :  { %157 = vmatpush.msra.mxu3 %v72_v4 }
  0x12   :  { %v76_v12 = vand.u32 4294901760, %v75_v9  ;;  %133 = vmatpush.msra.mxu2 %v104_v8  ;;  %v100_v13 = vsub.f32 %v98_v7, %v99_v10  ;;  %182 = vmatpush.msrb.mxu0 %v99_v10  ;;  %v106_v14 = vsub.f32 %v104_v8, %v105_v11 }
  0x13   :  { %136 = vmatmul.f32.vlgmr.msra.gmra.mxu2 %v75_v9 }
  0x14   :  { %v77_v15 = vsub.f32 %v75_v9, %v76_v12  ;;  %161 = vmatmul.f32.vlgmr.msra.gmra.mxu3 %v76_v12  ;;  %v101_v16 = vand.u32 4294901760, %v100_v13  ;;  %v107_v17 = vand.u32 4294901760, %v106_v14  ;;  %186 = vmatpush.msrb.mxu0 %v105_v11 }
  0x16   :  { %v78_v18 = vand.u32 4294901760, %v77_v15  ;;  %102 = vmatpush.msra.mxu1 %v101_v16 }
  0x18   :  { %79 = vmatmul.f32.vlgmr.msra.gmra.mxu0 %v78_v18  ;;  %108 = vmatpush.msra.mxu1 %v107_v17 }
  0x19   :  { %110 = vmatmul.f32.vlgmr.msra.gmra.mxu1 %v74_v6 }
  0x1a   :  { %207 = vmatpush.msrb.mxu1 %v70_v3 }
  0x1c   :  { %209 = vmatpush.msrb.mxu1 %v72_v4 }
  0x20   :  { %188 = vmatmul.f32.vlgmr.msrb.gmra.mxu0 %v74_v6 }
  0x21   :  { %211 = vmatmul.f32.vlgmr.msrb.gmra.mxu1 %v74_v6 }
  0x95   :  { %v80_v20 = vpop.f32.mrf.mxu0 }
  0x96   :  { %v81_v21 = vadd.f32 %v240_v19, %v80_v20  ;;  %v111_v22 = vpop.f32.mrf.mxu1  ;;  %v137_v23 = vpop.f32.mrf.mxu2 }
  0x97   :  { %v162_v25 = vpop.f32.mrf.mxu3 }
  0x98   :  { %v112_v24 = vadd.f32 %v111_v22, %v81_v21 }
  0x9a   :  { %v138_v26 = vadd.f32 %v137_v23, %v112_v24 }
  0x9c   :  { %v163_v27 = vadd.f32 %v162_v25, %v138_v26 }
  0x9d   :  { %v189_v28 = vpop.f32.mrf.mxu0 }
  0x9e   :  { %v190_v29 = vadd.f32 %v189_v28, %v163_v27  ;;  %v212_v30 = vpop.f32.mrf.mxu1 }
  0xa0   :  { %v213_v31 = vadd.f32 %v212_v30, %v190_v29 }
  0xa2   :  { %216 = vst.msk [vmem:[#allocation7] sm:$0x3] %vm215_vm1, %v213_v31 }
  0xa3   :  { %227 = dma.vmem_to_hbm [thread:$0]  %s223_s25, 32, %s225_s28, [#allocation4]  }
  0xa4   :  { %317 = dma.done.wait [#allocation4], 32  }
  0xa5   :  { %318 = vsyncadd [#allocation4], 4294967264 }
  0xa6   :  { %232 = vsyncpa [#allocation3], 1 }
  0xa7   :  { %233 = vsyncpa [#allocation6], 1 }
  0xa8   :  { %234 = vsyncpa [#allocation4], 1 }

</bundles_post_ra>
